<compile_context>
chip_gen: v6e
topology: v6e:2x2x1
jax: 0.10.0
libtpu: 0.0.40
codegen_flags: <defaults>
</compile_context>

<pallas_src>
import math

import numpy as np
import jax
import jax.numpy as jnp
from jax.experimental import pallas as pl
from jax.experimental.pallas import tpu as pltpu


# ----------------------------------------------------------------------------
# Parameter construction (deterministic, mirrors get_binomial_filter exactly)
# ----------------------------------------------------------------------------
def get_binomial_filter(kernel_size: int) -> np.ndarray:
    # scipy.linalg.pascal(kernel_size, kind='lower', exact=True) replacement:
    # lower-triangular Pascal matrix P[i, j] = C(i, j).
    P = np.zeros((kernel_size, kernel_size), dtype=np.float64)
    for i in range(kernel_size):
        for j in range(i + 1):
            P[i, j] = math.comb(i, j)
    norm = np.sqrt(np.mean(P ** 2))                      # mean over the full matrix
    row = (P[kernel_size - 1, :] / norm).astype("float32")
    # weights = weights / weights.square().mean().sqrt()
    row = row / np.sqrt(np.mean(row.astype(np.float32) ** 2)).astype(np.float32)
    return row.astype(np.float32)


# ----------------------------------------------------------------------------
# Pallas kernel: K-tap FIR along the lane (time) axis
# ----------------------------------------------------------------------------
def _binomial_fir_kernel(wm_ref, x_ref, o_ref):
    # wm_ref : (K, Tp) float32 VMEM — per-lane edge-masked taps
    #          wm[j, t] = w[j] if 0 <= t + (j - left) < T_true else 0
    # x_ref  : (rows, Tp) — signal rows, lane axis padded to a 128 multiple
    # o_ref  : (rows, Tp)
    K, Tp = wm_ref.shape
    left = (K - 1) // 2

    x = x_ref[...].astype(jnp.float32)
    wm = wm_ref[...]

    # Center tap needs no shift; edge masking is baked into wm.
    acc = wm[left:left + 1, :] * x
    for j in range(K):                         # K is tiny; static unroll
        s = j - left
        if s == 0:
            continue
        # out[t] += w_mask[j, t] * x[(t + s) mod Tp]; wrapped / out-of-range
        # positions are killed by the zeroed weights, so no select is needed.
        shifted = pltpu.roll(x, shift=(-s) % Tp, axis=1)
        acc = acc + wm[j:j + 1, :] * shifted

    o_ref[...] = acc.astype(o_ref.dtype)


def _round_up(a: int, m: int) -> int:
    return ((a + m - 1) // m) * m


def _pick_rows(bc: int, tp: int, itemsize: int) -> int:
    # Sublane packing: 8 rows for 4-byte, 16 for 2-byte, 32 for 1-byte dtypes.
    sub = 8 if itemsize >= 4 else (16 if itemsize == 2 else 32)
    # ~6 MiB per block buffer (input & output each, double-buffered by Pallas):
    # large enough that the ~0.35 us per-grid-step overhead is a few percent of
    # the block's HBM time on v6e/v7x, small enough that 4 buffers < 40 MiB.
    block_budget_bytes = 6 << 20
    budget = max(sub, (block_budget_bytes // max(tp * itemsize, 1)) // sub * sub)
    # Keep >= ~8 grid blocks when BC allows it, so the "parallel" row grid can
    # balance across v7x's two TensorCores (no-op on v5e/v6e).
    balanced = max(sub, _round_up((bc + 7) // 8, sub))
    rows = min(budget, balanced)
    if rows >= bc:
        rows = bc          # full-dim block is always layout-legal
    return rows


def binomial_anti_alias(x: jax.Array, weights: jax.Array) -> jax.Array:
    """Depthwise conv1d(x, weights, padding='same', groups=C); x is (B, C, T)."""
    B, C, T = x.shape
    K = int(weights.shape[0])
    left = (K - 1) // 2
    BC = B * C
    itemsize = x.dtype.itemsize

    # Lane-align the time axis (no copy at all when T is already a multiple
    # of 128, which is the perf-relevant case).
    Tp = max(128, _round_up(T, 128))
    x2 = x.reshape(BC, T)
    if Tp != T:
        # TODO(synk): zero-copy ragged-tail path (full-T block + in-kernel mask)
        # to avoid this extra HBM read+write for non-aligned frame lengths.
        x2 = jnp.pad(x2, ((0, 0), (0, Tp - T)))

    # Edge-masked taps: wm[j, t] = w[j] iff the 'same'-padding source index
    # t + (j - left) lies inside the true signal [0, T), else 0.
    t_idx = jnp.arange(Tp, dtype=jnp.int32)[None, :]
    s_off = jnp.arange(K, dtype=jnp.int32)[:, None] - left
    valid = jnp.logical_and(t_idx + s_off >= 0, t_idx + s_off < T)
    wm = jnp.where(valid, weights.astype(jnp.float32)[:, None], 0.0)

    rows = _pick_rows(BC, Tp, itemsize)
    grid = (pl.cdiv(BC, rows),)

    # VMEM footprint: in + out blocks, each double-buffered, plus the tap matrix.
    vmem_need = 4 * rows * Tp * itemsize + 2 * K * Tp * 4
    if vmem_need > (36 << 20):
        # TODO(synk): time-tiled (K-1)-halo path for extremely long signals.
        raise NotImplementedError(
            "BinomialAntiAlias Pallas kernel: signal too long for whole-T "
            f"blocks (needs {vmem_need >> 20} MiB VMEM); time tiling required.")
    vmem_limit = int(min(40 << 20, max(16 << 20, vmem_need + (4 << 20))))

    out = pl.pallas_call(
        _binomial_fir_kernel,
        out_shape=jax.ShapeDtypeStruct((BC, Tp), x.dtype),
        grid=grid,
        in_specs=[
            # Constant block -> Pallas skips re-DMA across grid steps.
            pl.BlockSpec((K, Tp), lambda i: (0, 0)),        # masked taps
            pl.BlockSpec((rows, Tp), lambda i: (i, 0)),     # signal rows
        ],
        out_specs=pl.BlockSpec((rows, Tp), lambda i: (i, 0)),
        compiler_params=pltpu.CompilerParams(
            dimension_semantics=("parallel",),   # shard rows over 2 TCs on v7x
            vmem_limit_bytes=vmem_limit,
        ),
        cost_estimate=pl.CostEstimate(
            flops=2 * K * BC * Tp,
            transcendentals=0,
            bytes_accessed=2 * BC * Tp * itemsize + K * Tp * 4,
        ),
    )(wm, x2)

    if Tp != T:
        out = out[:, :T]
    return out.reshape(B, C, T)


# ----------------------------------------------------------------------------
# Plain-JAX reference (same math, no Pallas) for a sanity check
# ----------------------------------------------------------------------------
def _reference(x, weights):
    B, C, T = x.shape
    K = weights.shape[0]
    left = (K - 1) // 2
    right = (K - 1) - left
    xpad = jnp.pad(x.reshape(B * C, T), ((0, 0), (left, right)))
    out = sum(weights[j] * xpad[:, j:j + T] for j in range(K))
    return out.reshape(B, C, T)


if __name__ == "__main__":
    key = jax.random.PRNGKey(0)

    # Cover: module's toy shape (small T, padded to 128), lane-aligned even K,
    # odd K (asymmetry check), and larger K with non-128-multiple T
    # (shifts of both signs, magnitude > 2 — locks the roll/mask convention).
    cases = [
        (4, (2, 4, 16)),     # primary small shape from the module
        (4, (2, 4, 256)),    # lane-aligned, pad-free path
        (5, (2, 4, 384)),    # odd K
        (7, (2, 3, 200)),    # larger K, ragged T (padded to 256)
    ]

    for K, shape in cases:
        weights = jnp.asarray(get_binomial_filter(K), dtype=jnp.float32)
        key, sub = jax.random.split(key)
        x = jax.random.normal(sub, shape, dtype=jnp.float32)
        y = jax.block_until_ready(binomial_anti_alias(x, weights))
        np.testing.assert_allclose(
            np.asarray(y), np.asarray(_reference(x, weights)),
            rtol=1e-5, atol=1e-5)
        assert y.shape == shape

    print("KERNEL_OK")
</pallas_src>

<mosaic_0001>
module attributes {stable_mosaic.version = 11 : i64} {
  func.func @_binomial_fir_kernel(%arg0: i32, %arg1: memref<4x128xf32, #tpu.memory_space<vmem>>, %arg2: memref<8x128xf32, #tpu.memory_space<vmem>>, %arg3: memref<8x128xf32, #tpu.memory_space<vmem>>) attributes {dimension_semantics = [#tpu.dimension_semantics<parallel>], iteration_bounds = array<i64: 1>, scalar_prefetch = 0 : i64, scratch_operands = 0 : i64, tpu.core_type = #tpu.core_type<tc>, window_params = [{pipeline_mode = #tpu.pipeline_mode<synchronous>, transform_indices = @transform_0, window_bounds = array<i64: 4, 128>}, {transform_indices = @transform_1, window_bounds = array<i64: 8, 128>}, {transform_indices = @transform_2, window_bounds = array<i64: 8, 128>}]} {
    %c0 = arith.constant 0 : index
    %c0_0 = arith.constant 0 : index
    %0 = vector.load %arg2[%c0, %c0_0] : memref<8x128xf32, #tpu.memory_space<vmem>>, vector<8x128xf32>
    %c0_1 = arith.constant 0 : index
    %c0_2 = arith.constant 0 : index
    %1 = vector.load %arg1[%c0_1, %c0_2] : memref<4x128xf32, #tpu.memory_space<vmem>>, vector<4x128xf32>
    %2 = vector.extract_strided_slice %1 {offsets = [1, 0], sizes = [1, 128], strides = [1, 1]} : vector<4x128xf32> to vector<1x128xf32>
    %3 = vector.broadcast %2 : vector<1x128xf32> to vector<8x128xf32>
    %4 = arith.mulf %3, %0 : vector<8x128xf32>
    %c1_i32 = arith.constant 1 : i32
    %5 = tpu.dynamic_rotate %0 by %c1_i32 dim 1 : vector<8x128xf32>, i32 -> vector<8x128xf32>
    %6 = vector.extract_strided_slice %1 {offsets = [0, 0], sizes = [1, 128], strides = [1, 1]} : vector<4x128xf32> to vector<1x128xf32>
    %7 = vector.broadcast %6 : vector<1x128xf32> to vector<8x128xf32>
    %8 = arith.mulf %7, %5 : vector<8x128xf32>
    %9 = arith.addf %4, %8 : vector<8x128xf32>
    %c127_i32 = arith.constant 127 : i32
    %10 = tpu.dynamic_rotate %0 by %c127_i32 dim 1 : vector<8x128xf32>, i32 -> vector<8x128xf32>
    %11 = vector.extract_strided_slice %1 {offsets = [2, 0], sizes = [1, 128], strides = [1, 1]} : vector<4x128xf32> to vector<1x128xf32>
    %12 = vector.broadcast %11 : vector<1x128xf32> to vector<8x128xf32>
    %13 = arith.mulf %12, %10 : vector<8x128xf32>
    %14 = arith.addf %9, %13 : vector<8x128xf32>
    %c126_i32 = arith.constant 126 : i32
    %15 = tpu.dynamic_rotate %0 by %c126_i32 dim 1 : vector<8x128xf32>, i32 -> vector<8x128xf32>
    %16 = vector.extract_strided_slice %1 {offsets = [3, 0], sizes = [1, 128], strides = [1, 1]} : vector<4x128xf32> to vector<1x128xf32>
    %17 = vector.broadcast %16 : vector<1x128xf32> to vector<8x128xf32>
    %18 = arith.mulf %17, %15 : vector<8x128xf32>
    %19 = arith.addf %14, %18 : vector<8x128xf32>
    %c0_3 = arith.constant 0 : index
    %c0_4 = arith.constant 0 : index
    %20 = vector.load %arg3[%c0_3, %c0_4] : memref<8x128xf32, #tpu.memory_space<vmem>>, vector<8x128xf32>
    tpu.vector_store %arg3[%c0_3, %c0_4], %19 {strides = array<i32>} : memref<8x128xf32, #tpu.memory_space<vmem>>, vector<8x128xf32>,
    return
  }
  func.func @transform_0(%arg0: i32) -> (i32, i32) {
    %c0_i32 = arith.constant 0 : i32
    %c0_i32_0 = arith.constant 0 : i32
    %c0_i32_1 = arith.constant 0 : i32
    return %c0_i32, %c0_i32_0 : i32, i32
  }
  func.func @transform_1(%arg0: i32) -> (i32, i32) {
    %c0_i32 = arith.constant 0 : i32
    %c0_i32_0 = arith.constant 0 : i32
    return %arg0, %c0_i32 : i32, i32
  }
  func.func @transform_2(%arg0: i32) -> (i32, i32) {
    %c0_i32 = arith.constant 0 : i32
    %c0_i32_0 = arith.constant 0 : i32
    return %arg0, %c0_i32 : i32, i32
  }
}

</mosaic_0001>

<bundles_post_ra>
// kernel: tpu_custom_call.1
= control target key start
LH: loop header
LB: loop body
LE: loop exit
PB: predicated region body
PF: predicated region fallthrough
CT: control target
= control target key end

     0   :  { %7 = vsyncpa [#allocation3], 0  ;;  %s186_s0 = inlined_call_operand.hbm [shape: f32[4,128], index: 0, kind: input, shape index: {}]   ;;  %s187_s1 = inlined_call_operand.hbm [shape: f32[8,128], index: 1, kind: input, shape index: {}]   ;;  %s188_s2 = inlined_call_operand.hbm [shape: f32[8,128], index: 2, kind: output, shape index: {}]  }
   0x1   :  { %8 = vsyncpa [#allocation6], 0 }
   0x2   :  { %9 = vsyncpa [#allocation4], 0  ;;  %s156_s9 = smov [#allocation2]   ;;  %s157_s11 = smov [#allocation5]  }
   0x3   :  { %s16_s10 = sshll.u32 %s156_s9, 4  ;;  %s26_s12 = sshll.u32 %s157_s11, 4  ;;  %s17_s10 = int_to_ptr.vmem [resolvable:$true] %s16_s10  ;;  %s27_s12 = int_to_ptr.vmem [resolvable:$true] %s26_s12 }
   0x4   :  { %s98_s13 = scalar_lea.vmem %s17_s10, 64  ;;  %p103_p1 = scmp.lt.s32.totalorder %s17_s10, %s17_s10 }
   0x5   :  { %p99_p0 = scmp.ne.s32.totalorder %s17_s10, %s98_s13  ;;  %p104_p2 = scmp.lt.s32.totalorder %s98_s13, %s98_s13 }
   0x7   :  { %p105_p3 = por %p104_p2, %p103_p1 }
   0x9   :  { %p106_p4 = pnand %p105_p3, %p99_p0 }
   0xb   :  { %109 = shalt.err (!%p106_p4)
}
   0xc   :  { %19 = dma.hbm_to_vmem [thread:$0]  %s186_s0, 64, %s17_s10, [#allocation3]  }
   0xd   :  { %s118_s16 = scalar_lea.vmem %s27_s12, 128  ;;  %p123_p6 = scmp.lt.s32.totalorder %s27_s12, %s27_s12 }
   0xe   :  { %p119_p5 = scmp.ne.s32.totalorder %s27_s12, %s118_s16  ;;  %p124_p7 = scmp.lt.s32.totalorder %s118_s16, %s118_s16 }
  0x10   :  { %p125_p8 = por %p124_p7, %p123_p6 }
  0x12   :  { %p126_p9 = pnand %p125_p8, %p119_p5 }
  0x14   :  { %129 = shalt.err (!%p126_p9)
}
  0x15   :  { %29 = dma.hbm_to_vmem [thread:$0]  %s187_s1, 128, %s27_s12, [#allocation6]  }
  0x16   :  { %150 = dma.done.wait [#allocation3], 64  }
  0x17   :  { %151 = vsyncadd [#allocation3], 4294967232 }
  0x18   :  { %152 = dma.done.wait [#allocation6], 128  }
  0x19   :  { %153 = vsyncadd [#allocation6], 4294967168  ;;  %v36_v0 = vld [vmem:[#allocation5] sm:$0xff]  ;;  %s158_s19 = smov 1   ;;  %s159_s20 = smov 126   ;;  %v38_v1 = vlaneseq }
  0x1a   :  { %43 = vrot.lane.b32.xlu0 %v36_v0, %s158_s19  ;;  %59 = vrot.lane.b32.xlu1 %v36_v0, %s159_s20  ;;  %s160_s0 = smov 127   ;;  %v37_v5 = vld [vmem:[#allocation2] sm:$0xf]  ;;  %s161_s1 = smov [#allocation7]  }
  0x1b   :  { %v39_v2 = vshrl.u32 %v38_v1, 7  ;;  %s74_s21 = sshll.u32 %s161_s1, 4  ;;  %s75_s21 = int_to_ptr.vmem [resolvable:$true] %s74_s21 }
  0x1c   :  { %s130_s22 = scalar_lea.vmem %s75_s21, 128  ;;  %p135_p11 = scmp.lt.s32.totalorder %s75_s21, %s75_s21 }
  0x1d   :  { %v40_v3 = vsub.s32 1, %v39_v2  ;;  %v47_v4 = vsub.s32 0, %v39_v2  ;;  %v55_v8 = vsub.s32 2, %v39_v2  ;;  %v63_v9 = vsub.s32 3, %v39_v2  ;;  %p131_p10 = scmp.ne.s32.totalorder %s75_s21, %s130_s22  ;;  %p136_p12 = scmp.lt.s32.totalorder %s130_s22, %s130_s22 }
  0x1e   :  { %51 = vrot.lane.b32.xlu0 %v36_v0, %s160_s0 }
  0x1f   :  { %v41_v6 = vrot.slane %v37_v5, %v40_v3  ;;  %v48_v7 = vrot.slane %v37_v5, %v47_v4  ;;  %v56_v13 = vrot.slane %v37_v5, %v55_v8  ;;  %v64_v14 = vrot.slane %v37_v5, %v63_v9  ;;  %p137_p13 = por %p136_p12, %p135_p11 }
  0x21   :  { %v42_v11 = vmul.f32 %v41_v6, %v36_v0  ;;  %p138_p0 = pnand %p137_p13, %p131_p10 }
  0x8c   :  { %v44_v10 = vpop.permute.xlu0 %43  ;;  %v60_v15 = vpop.permute.xlu1 %59 }
  0x8d   :  { %v49_v12 = vmul.f32 %v48_v7, %v44_v10  ;;  %v65_v19 = vmul.f32 %v64_v14, %v60_v15 }
  0x8f   :  { %v50_v17 = vadd.f32 %v49_v12, %v42_v11 }
  0x90   :  { %v52_v16 = vpop.permute.xlu0 %51 }
  0x91   :  { %v57_v18 = vmul.f32 %v56_v13, %v52_v16 }
  0x93   :  { %v58_v20 = vadd.f32 %v57_v18, %v50_v17 }
  0x95   :  { %v66_v21 = vadd.f32 %v65_v19, %v58_v20 }
  0x97   :  { %67 = vst [vmem:[#allocation7] sm:$0xff] %v66_v21 }
  0x98   :  { %141 = shalt.err (!%p138_p0)
}
  0x99   :  { %77 = dma.vmem_to_hbm [thread:$0]  %s75_s21, 128, %s188_s2, [#allocation4]  }
  0x9a   :  { %154 = dma.done.wait [#allocation4], 128  }
  0x9b   :  { %155 = vsyncadd [#allocation4], 4294967168 }
  0x9c   :  { %81 = vsyncpa [#allocation3], 1 }
  0x9d   :  { %82 = vsyncpa [#allocation6], 1 }
  0x9e   :  { %83 = vsyncpa [#allocation4], 1 }

</bundles_post_ra>
